<compile_context>
chip_gen: v6e
topology: v6e:2x2x1
jax: 0.10.0
libtpu: 0.0.40
codegen_flags: <defaults>
</compile_context>

<pallas_src>
import itertools
import functools
import math

import jax
import jax.numpy as jnp
from jax.experimental import pallas as pl
from jax.experimental.pallas import tpu as pltpu

_LANE = 128  # one full lane group; per-plane HBM contiguity is tile_r*_LANE


def _tensor_product_kernel(x_ref, o_ref, *, dim, order):
    """One grid step: all (order+1)**dim monomial terms for one row-tile.

    x_ref: (dim,    tile_r, 128) VMEM — lane/sublane-dense coordinate planes
    o_ref: (nterms, tile_r, 128) VMEM — one lane-dense plane per term
    """
    out_dtype = o_ref.dtype
    acc = jnp.float32  # compute in f32 even for bf16/fp16 inputs (v5e has no bf16 VPU)

    # Innermost-dim powers are reused by every one of the (order+1)^(dim-1)
    # leaf groups -> precompute once.  Outer dims are handled lazily below.
    x_in = x_ref[dim - 1].astype(acc)
    inner_pw = [None]  # exponent 0 -> no factor at all (x**0 == 1, incl. 0**0)
    if order >= 1:
        inner_pw.append(x_in)
        for _ in range(order - 1):
            inner_pw.append(inner_pw[-1] * x_in)

    stride = [(order + 1) ** (dim - 1 - d) for d in range(dim)]

    def leaf(t_base, partial):
        for p in range(order + 1):
            if p == 0:
                cur = partial
            elif partial is None:
                cur = inner_pw[p]
            else:
                cur = partial * inner_pw[p]
            t = t_base + p
            if cur is None:
                # every exponent is zero: the term is identically 1
                o_ref[t] = jnp.ones(o_ref.shape[1:], out_dtype)
            else:
                o_ref[t] = cur.astype(out_dtype)  # streaming, unmasked full-slab vst

    def emit(d, t_base, partial):
        if d == dim - 1:
            leaf(t_base, partial)
            return
        xd = x_ref[d].astype(acc)
        pw = None  # x_d**p, built incrementally -> only ~2 live slabs per level
        for p in range(order + 1):
            if p == 1:
                pw = xd
            elif p >= 2:
                pw = pw * xd
            if p == 0:
                nxt = partial
            elif partial is None:
                nxt = pw
            else:
                nxt = partial * pw
            emit(d + 1, t_base + p * stride[d], nxt)

    # TODO(synk): for very large (order+1)**dim this full unroll bloats
    # trace/compile time; switch emit() to an in-kernel fori_loop in that case.
    emit(0, 0, None)


def _vmem_capacity_bytes():
    try:
        info = pltpu.get_tpu_info()
        cap = int(getattr(info, "vmem_capacity_bytes", 0))
        if cap > 0:
            return cap
    except Exception:
        pass
    return 64 * 1024 * 1024  # conservative default: v7x per-TensorCore VMEM


def tensor_product(x, dim, order, *, out_layout="terms_last", tile_r=None):
    """Pallas implementation of TensorProduct(dim, order).forward(x).

    out_layout:
      "terms_last"  (default) -> x.shape[:-1] + (nterms,)  (exact module output)
      "terms_major"           -> (nterms,) + x.shape[:-1]; skips the final
                                 layout transpose for consumers that accept the
                                 K-major operand (e.g. a contraction over nterms).
    """
    assert x.shape[-1] == dim, f"last axis of x must be dim={dim}"
    assert jnp.issubdtype(x.dtype, jnp.floating), "float input expected"
    assert out_layout in ("terms_last", "terms_major")

    nterms = (order + 1) ** dim
    lead = x.shape[:-1]
    m = math.prod(lead) if lead else 1
    itemsize = jnp.dtype(x.dtype).itemsize
    sub = 8 if itemsize >= 4 else 16  # sublane tile (f32: 8; bf16/fp16: 16)

    # ---- generation-aware VMEM budgets ---------------------------------------
    vmem_cap = _vmem_capacity_bytes()
    small_vmem = vmem_cap <= (72 << 20)                     # v7x-class (64 MiB/TC)
    out_budget = (8 << 20) if small_vmem else (24 << 20)    # dbl-buffered out block

    # ---- tiling ----------------------------------------------------------------
    rows_needed = pl.cdiv(m, _LANE)
    tile_r_budget = out_budget // (2 * nterms * _LANE * itemsize)
    tile_r_budget = max(sub, min(2048, (tile_r_budget // sub) * sub))
    if tile_r is None:
        # >=2 steps whenever there is more than one sublane tile of work, so
        # "parallel" sharding can use both v7x TensorCores.
        min_steps = 2 if rows_needed > sub else 1
        num_steps = max(min_steps, pl.cdiv(rows_needed, tile_r_budget))
        tile_r = sub * pl.cdiv(pl.cdiv(rows_needed, num_steps), sub)
    else:
        tile_r = max(sub, (int(tile_r) // sub) * sub)
    num_steps = max(1, pl.cdiv(rows_needed, tile_r))
    r_total = num_steps * tile_r
    m_pad = r_total * _LANE  # overshoot bounded by ~num_steps*sub rows

    # ---- input plumbing: one transpose pass over the (dim-sized) input ---------
    xt = x.reshape(m, dim).T                         # (dim, m)
    if m_pad != m:
        xt = jnp.pad(xt, ((0, 0), (0, m_pad - m)))   # pad after transpose (fusible)
    xt = xt.reshape(dim, r_total, _LANE)

    # ---- VMEM accounting / compiler params -------------------------------------
    blk = tile_r * _LANE
    io_bytes = 2 * (dim + nterms) * blk * itemsize       # double-buffered in + out
    live_slabs = (order + 1) + 2 * dim + 2               # inner powers + lazy partials
    scratch_bytes = live_slabs * blk * 4                 # f32 temporaries (spill bound)
    vmem_need = io_bytes + scratch_bytes
    vmem_limit = min(vmem_cap * 3 // 4, max(32 << 20, vmem_need * 5 // 4))
    vmem_limit = max(vmem_limit, vmem_need)

    kernel = functools.partial(_tensor_product_kernel, dim=dim, order=order)

    out3 = pl.pallas_call(
        kernel,
        out_shape=jax.ShapeDtypeStruct((nterms, r_total, _LANE), x.dtype),
        grid_spec=pltpu.PrefetchScalarGridSpec(
            num_scalar_prefetch=0,
            grid=(num_steps,),
            in_specs=[pl.BlockSpec((dim, tile_r, _LANE), lambda i: (0, i, 0))],
            # Default 2-deep buffering: the output-write DMA is already
            # back-to-back; deeper buffering would only eat VMEM.
            out_specs=pl.BlockSpec((nterms, tile_r, _LANE), lambda i: (0, i, 0)),
        ),
        compiler_params=pltpu.CompilerParams(
            dimension_semantics=("parallel",),
            vmem_limit_bytes=int(vmem_limit)),
    )(xt)

    out2 = out3.reshape(nterms, m_pad)[:, :m]       # drop padding before any relayout
    if out_layout == "terms_major":
        return out2.reshape((nterms,) + lead)       # no transpose at all
    # Module semantics: single fused XLA transpose over exactly nterms*M elements.
    return out2.T.reshape(*lead, nterms)


def tensor_product_ref(x, dim, order):
    """Pure-JAX reference mirroring the PyTorch forward exactly."""
    indc = list(itertools.product(*[range(order + 1) for _ in range(dim)]))
    cols = []
    for ind in indc:
        cols.append(jnp.prod(
            jnp.stack([x[..., d] ** ind[d] for d in range(dim)]), axis=0))
    return jnp.stack(cols, axis=-1)


if __name__ == "__main__":
    dim, order = 2, 3                 # nterms = (order+1)^dim = 16
    batch, seq = 2, 8                 # x: [2, 8, 2]

    key = jax.random.PRNGKey(0)
    x = jax.random.normal(key, (batch, seq, dim), dtype=jnp.float32)

    out = jax.block_until_ready(tensor_product(x, dim, order))
    ref = tensor_product_ref(x, dim, order)
    assert out.shape == ref.shape == (batch, seq, (order + 1) ** dim)
    assert jnp.allclose(out, ref, atol=1e-5, rtol=1e-5), "mismatch vs reference"

    # terms-major layout (no output transpose) — review option (a)
    out_km = jax.block_until_ready(
        tensor_product(x, dim, order, out_layout="terms_major"))
    assert jnp.allclose(out_km, jnp.moveaxis(ref, -1, 0), atol=1e-5, rtol=1e-5)

    # larger input -> >=2 grid steps (pipelined path, megacore sharding)
    x2 = jax.random.normal(jax.random.PRNGKey(0), (4, 4096, dim), dtype=jnp.float32)
    out2 = jax.block_until_ready(tensor_product(x2, dim, order))
    assert jnp.allclose(out2, tensor_product_ref(x2, dim, order),
                        atol=1e-5, rtol=1e-5), "mismatch (multi-step) vs reference"

    # ragged size + explicit small tile override -> minimal-padding path
    x3 = jax.random.normal(jax.random.PRNGKey(0), (3, 1000, dim), dtype=jnp.float32)
    out3 = jax.block_until_ready(tensor_product(x3, dim, order, tile_r=8))
    assert jnp.allclose(out3, tensor_product_ref(x3, dim, order),
                        atol=1e-5, rtol=1e-5), "mismatch (ragged) vs reference"

    print("KERNEL_OK")
</pallas_src>

<mosaic_0001>
module attributes {stable_mosaic.version = 11 : i64} {
  func.func @_tensor_product_kernel(%arg0: i32, %arg1: memref<2x8x128xf32, #tpu.memory_space<vmem>>, %arg2: memref<16x8x128xf32, #tpu.memory_space<vmem>>) attributes {dimension_semantics = [#tpu.dimension_semantics<parallel>], iteration_bounds = array<i64: 1>, scalar_prefetch = 0 : i64, scratch_operands = 0 : i64, tpu.core_type = #tpu.core_type<tc>, window_params = [{transform_indices = @transform_0, window_bounds = array<i64: 2, 8, 128>}, {transform_indices = @transform_1, window_bounds = array<i64: 16, 8, 128>}]} {
    %c1 = arith.constant 1 : index
    %c0 = arith.constant 0 : index
    %c0_0 = arith.constant 0 : index
    %0 = vector.load %arg1[%c1, %c0, %c0_0] : memref<2x8x128xf32, #tpu.memory_space<vmem>>, vector<1x8x128xf32>
    %1 = vector.shape_cast %0 : vector<1x8x128xf32> to vector<8x128xf32>
    %2 = arith.mulf %1, %1 : vector<8x128xf32>
    %3 = arith.mulf %2, %1 : vector<8x128xf32>
    %c0_1 = arith.constant 0 : index
    %c0_2 = arith.constant 0 : index
    %c0_3 = arith.constant 0 : index
    %4 = vector.load %arg1[%c0_1, %c0_2, %c0_3] : memref<2x8x128xf32, #tpu.memory_space<vmem>>, vector<1x8x128xf32>
    %5 = vector.shape_cast %4 : vector<1x8x128xf32> to vector<8x128xf32>
    %cst = arith.constant 1.000000e+00 : f32
    %6 = vector.broadcast %cst : f32 to vector<8x128xf32>
    %c0_4 = arith.constant 0 : index
    %c0_5 = arith.constant 0 : index
    %c0_6 = arith.constant 0 : index
    %7 = vector.load %arg2[%c0_4, %c0_5, %c0_6] : memref<16x8x128xf32, #tpu.memory_space<vmem>>, vector<1x8x128xf32>
    %8 = vector.shape_cast %7 : vector<1x8x128xf32> to vector<8x128xf32>
    %9 = vector.shape_cast %6 : vector<8x128xf32> to vector<1x8x128xf32>
    tpu.vector_store %arg2[%c0_4, %c0_5, %c0_6], %9 {strides = array<i32>} : memref<16x8x128xf32, #tpu.memory_space<vmem>>, vector<1x8x128xf32>,
    %c1_7 = arith.constant 1 : index
    %c0_8 = arith.constant 0 : index
    %c0_9 = arith.constant 0 : index
    %10 = vector.load %arg2[%c1_7, %c0_8, %c0_9] : memref<16x8x128xf32, #tpu.memory_space<vmem>>, vector<1x8x128xf32>
    %11 = vector.shape_cast %10 : vector<1x8x128xf32> to vector<8x128xf32>
    %12 = vector.shape_cast %1 : vector<8x128xf32> to vector<1x8x128xf32>
    tpu.vector_store %arg2[%c1_7, %c0_8, %c0_9], %12 {strides = array<i32>} : memref<16x8x128xf32, #tpu.memory_space<vmem>>, vector<1x8x128xf32>,
    %c2 = arith.constant 2 : index
    %c0_10 = arith.constant 0 : index
    %c0_11 = arith.constant 0 : index
    %13 = vector.load %arg2[%c2, %c0_10, %c0_11] : memref<16x8x128xf32, #tpu.memory_space<vmem>>, vector<1x8x128xf32>
    %14 = vector.shape_cast %13 : vector<1x8x128xf32> to vector<8x128xf32>
    %15 = vector.shape_cast %2 : vector<8x128xf32> to vector<1x8x128xf32>
    tpu.vector_store %arg2[%c2, %c0_10, %c0_11], %15 {strides = array<i32>} : memref<16x8x128xf32, #tpu.memory_space<vmem>>, vector<1x8x128xf32>,
    %c3 = arith.constant 3 : index
    %c0_12 = arith.constant 0 : index
    %c0_13 = arith.constant 0 : index
    %16 = vector.load %arg2[%c3, %c0_12, %c0_13] : memref<16x8x128xf32, #tpu.memory_space<vmem>>, vector<1x8x128xf32>
    %17 = vector.shape_cast %16 : vector<1x8x128xf32> to vector<8x128xf32>
    %18 = vector.shape_cast %3 : vector<8x128xf32> to vector<1x8x128xf32>
    tpu.vector_store %arg2[%c3, %c0_12, %c0_13], %18 {strides = array<i32>} : memref<16x8x128xf32, #tpu.memory_space<vmem>>, vector<1x8x128xf32>,
    %c4 = arith.constant 4 : index
    %c0_14 = arith.constant 0 : index
    %c0_15 = arith.constant 0 : index
    %19 = vector.load %arg2[%c4, %c0_14, %c0_15] : memref<16x8x128xf32, #tpu.memory_space<vmem>>, vector<1x8x128xf32>
    %20 = vector.shape_cast %19 : vector<1x8x128xf32> to vector<8x128xf32>
    %21 = vector.shape_cast %5 : vector<8x128xf32> to vector<1x8x128xf32>
    tpu.vector_store %arg2[%c4, %c0_14, %c0_15], %21 {strides = array<i32>} : memref<16x8x128xf32, #tpu.memory_space<vmem>>, vector<1x8x128xf32>,
    %22 = arith.mulf %5, %1 : vector<8x128xf32>
    %c5 = arith.constant 5 : index
    %c0_16 = arith.constant 0 : index
    %c0_17 = arith.constant 0 : index
    %23 = vector.load %arg2[%c5, %c0_16, %c0_17] : memref<16x8x128xf32, #tpu.memory_space<vmem>>, vector<1x8x128xf32>
    %24 = vector.shape_cast %23 : vector<1x8x128xf32> to vector<8x128xf32>
    %25 = vector.shape_cast %22 : vector<8x128xf32> to vector<1x8x128xf32>
    tpu.vector_store %arg2[%c5, %c0_16, %c0_17], %25 {strides = array<i32>} : memref<16x8x128xf32, #tpu.memory_space<vmem>>, vector<1x8x128xf32>,
    %26 = arith.mulf %5, %2 : vector<8x128xf32>
    %c6 = arith.constant 6 : index
    %c0_18 = arith.constant 0 : index
    %c0_19 = arith.constant 0 : index
    %27 = vector.load %arg2[%c6, %c0_18, %c0_19] : memref<16x8x128xf32, #tpu.memory_space<vmem>>, vector<1x8x128xf32>
    %28 = vector.shape_cast %27 : vector<1x8x128xf32> to vector<8x128xf32>
    %29 = vector.shape_cast %26 : vector<8x128xf32> to vector<1x8x128xf32>
    tpu.vector_store %arg2[%c6, %c0_18, %c0_19], %29 {strides = array<i32>} : memref<16x8x128xf32, #tpu.memory_space<vmem>>, vector<1x8x128xf32>,
    %30 = arith.mulf %5, %3 : vector<8x128xf32>
    %c7 = arith.constant 7 : index
    %c0_20 = arith.constant 0 : index
    %c0_21 = arith.constant 0 : index
    %31 = vector.load %arg2[%c7, %c0_20, %c0_21] : memref<16x8x128xf32, #tpu.memory_space<vmem>>, vector<1x8x128xf32>
    %32 = vector.shape_cast %31 : vector<1x8x128xf32> to vector<8x128xf32>
    %33 = vector.shape_cast %30 : vector<8x128xf32> to vector<1x8x128xf32>
    tpu.vector_store %arg2[%c7, %c0_20, %c0_21], %33 {strides = array<i32>} : memref<16x8x128xf32, #tpu.memory_space<vmem>>, vector<1x8x128xf32>,
    %34 = arith.mulf %5, %5 : vector<8x128xf32>
    %c8 = arith.constant 8 : index
    %c0_22 = arith.constant 0 : index
    %c0_23 = arith.constant 0 : index
    %35 = vector.load %arg2[%c8, %c0_22, %c0_23] : memref<16x8x128xf32, #tpu.memory_space<vmem>>, vector<1x8x128xf32>
    %36 = vector.shape_cast %35 : vector<1x8x128xf32> to vector<8x128xf32>
    %37 = vector.shape_cast %34 : vector<8x128xf32> to vector<1x8x128xf32>
    tpu.vector_store %arg2[%c8, %c0_22, %c0_23], %37 {strides = array<i32>} : memref<16x8x128xf32, #tpu.memory_space<vmem>>, vector<1x8x128xf32>,
    %38 = arith.mulf %34, %1 : vector<8x128xf32>
    %c9 = arith.constant 9 : index
    %c0_24 = arith.constant 0 : index
    %c0_25 = arith.constant 0 : index
    %39 = vector.load %arg2[%c9, %c0_24, %c0_25] : memref<16x8x128xf32, #tpu.memory_space<vmem>>, vector<1x8x128xf32>
    %40 = vector.shape_cast %39 : vector<1x8x128xf32> to vector<8x128xf32>
    %41 = vector.shape_cast %38 : vector<8x128xf32> to vector<1x8x128xf32>
    tpu.vector_store %arg2[%c9, %c0_24, %c0_25], %41 {strides = array<i32>} : memref<16x8x128xf32, #tpu.memory_space<vmem>>, vector<1x8x128xf32>,
    %42 = arith.mulf %34, %2 : vector<8x128xf32>
    %c10 = arith.constant 10 : index
    %c0_26 = arith.constant 0 : index
    %c0_27 = arith.constant 0 : index
    %43 = vector.load %arg2[%c10, %c0_26, %c0_27] : memref<16x8x128xf32, #tpu.memory_space<vmem>>, vector<1x8x128xf32>
    %44 = vector.shape_cast %43 : vector<1x8x128xf32> to vector<8x128xf32>
    %45 = vector.shape_cast %42 : vector<8x128xf32> to vector<1x8x128xf32>
    tpu.vector_store %arg2[%c10, %c0_26, %c0_27], %45 {strides = array<i32>} : memref<16x8x128xf32, #tpu.memory_space<vmem>>, vector<1x8x128xf32>,
    %46 = arith.mulf %34, %3 : vector<8x128xf32>
    %c11 = arith.constant 11 : index
    %c0_28 = arith.constant 0 : index
    %c0_29 = arith.constant 0 : index
    %47 = vector.load %arg2[%c11, %c0_28, %c0_29] : memref<16x8x128xf32, #tpu.memory_space<vmem>>, vector<1x8x128xf32>
    %48 = vector.shape_cast %47 : vector<1x8x128xf32> to vector<8x128xf32>
    %49 = vector.shape_cast %46 : vector<8x128xf32> to vector<1x8x128xf32>
    tpu.vector_store %arg2[%c11, %c0_28, %c0_29], %49 {strides = array<i32>} : memref<16x8x128xf32, #tpu.memory_space<vmem>>, vector<1x8x128xf32>,
    %50 = arith.mulf %34, %5 : vector<8x128xf32>
    %c12 = arith.constant 12 : index
    %c0_30 = arith.constant 0 : index
    %c0_31 = arith.constant 0 : index
    %51 = vector.load %arg2[%c12, %c0_30, %c0_31] : memref<16x8x128xf32, #tpu.memory_space<vmem>>, vector<1x8x128xf32>
    %52 = vector.shape_cast %51 : vector<1x8x128xf32> to vector<8x128xf32>
    %53 = vector.shape_cast %50 : vector<8x128xf32> to vector<1x8x128xf32>
    tpu.vector_store %arg2[%c12, %c0_30, %c0_31], %53 {strides = array<i32>} : memref<16x8x128xf32, #tpu.memory_space<vmem>>, vector<1x8x128xf32>,
    %54 = arith.mulf %50, %1 : vector<8x128xf32>
    %c13 = arith.constant 13 : index
    %c0_32 = arith.constant 0 : index
    %c0_33 = arith.constant 0 : index
    %55 = vector.load %arg2[%c13, %c0_32, %c0_33] : memref<16x8x128xf32, #tpu.memory_space<vmem>>, vector<1x8x128xf32>
    %56 = vector.shape_cast %55 : vector<1x8x128xf32> to vector<8x128xf32>
    %57 = vector.shape_cast %54 : vector<8x128xf32> to vector<1x8x128xf32>
    tpu.vector_store %arg2[%c13, %c0_32, %c0_33], %57 {strides = array<i32>} : memref<16x8x128xf32, #tpu.memory_space<vmem>>, vector<1x8x128xf32>,
    %58 = arith.mulf %50, %2 : vector<8x128xf32>
    %c14 = arith.constant 14 : index
    %c0_34 = arith.constant 0 : index
    %c0_35 = arith.constant 0 : index
    %59 = vector.load %arg2[%c14, %c0_34, %c0_35] : memref<16x8x128xf32, #tpu.memory_space<vmem>>, vector<1x8x128xf32>
    %60 = vector.shape_cast %59 : vector<1x8x128xf32> to vector<8x128xf32>
    %61 = vector.shape_cast %58 : vector<8x128xf32> to vector<1x8x128xf32>
    tpu.vector_store %arg2[%c14, %c0_34, %c0_35], %61 {strides = array<i32>} : memref<16x8x128xf32, #tpu.memory_space<vmem>>, vector<1x8x128xf32>,
    %62 = arith.mulf %50, %3 : vector<8x128xf32>
    %c15 = arith.constant 15 : index
    %c0_36 = arith.constant 0 : index
    %c0_37 = arith.constant 0 : index
    %63 = vector.load %arg2[%c15, %c0_36, %c0_37] : memref<16x8x128xf32, #tpu.memory_space<vmem>>, vector<1x8x128xf32>
    %64 = vector.shape_cast %63 : vector<1x8x128xf32> to vector<8x128xf32>
    %65 = vector.shape_cast %62 : vector<8x128xf32> to vector<1x8x128xf32>
    tpu.vector_store %arg2[%c15, %c0_36, %c0_37], %65 {strides = array<i32>} : memref<16x8x128xf32, #tpu.memory_space<vmem>>, vector<1x8x128xf32>,
    return
  }
  func.func @transform_0(%arg0: i32) -> (i32, i32, i32) {
    %c0_i32 = arith.constant 0 : i32
    %c0_i32_0 = arith.constant 0 : i32
    %c0_i32_1 = arith.constant 0 : i32
    return %c0_i32, %arg0, %c0_i32_0 : i32, i32, i32
  }
  func.func @transform_1(%arg0: i32) -> (i32, i32, i32) {
    %c0_i32 = arith.constant 0 : i32
    %c0_i32_0 = arith.constant 0 : i32
    %c0_i32_1 = arith.constant 0 : i32
    return %c0_i32, %arg0, %c0_i32_0 : i32, i32, i32
  }
}

</mosaic_0001>

<bundles_post_ra>
// kernel: tpu_custom_call.1
= control target key start
LH: loop header
LB: loop body
LE: loop exit
PB: predicated region body
PF: predicated region fallthrough
CT: control target
= control target key end

     0   :  { %6 = vsyncpa [#allocation3], 0  ;;  %s163_s0 = inlined_call_operand.hbm [shape: f32[2,8,128], index: 0, kind: input, shape index: {}]   ;;  %s164_s1 = inlined_call_operand.hbm [shape: f32[16,8,128], index: 1, kind: output, shape index: {}]  }
   0x1   :  { %7 = vsyncpa [#allocation4], 0  ;;  %s136_s6 = smov [#allocation2]  }
   0x2   :  { %s13_s7 = sshll.u32 %s136_s6, 4  ;;  %s14_s7 = int_to_ptr.vmem [resolvable:$true] %s13_s7 }
   0x3   :  { %s100_s8 = scalar_lea.vmem %s14_s7, 256  ;;  %p105_p1 = scmp.lt.s32.totalorder %s14_s7, %s14_s7 }
   0x4   :  { %p101_p0 = scmp.ne.s32.totalorder %s14_s7, %s100_s8  ;;  %p106_p2 = scmp.lt.s32.totalorder %s100_s8, %s100_s8 }
   0x6   :  { %p107_p3 = por %p106_p2, %p105_p1 }
   0x8   :  { %p108_p4 = pnand %p107_p3, %p101_p0 }
   0xa   :  { %111 = shalt.err (!%p108_p4)
}
   0xb   :  { %s137_s9 = smov 128   ;;  %s138_s10 = smov 8  }
   0xc   :  { %19 = dma.hbm_to_vmem [thread:$0]  %s163_s0, 256, %s14_s7, [#allocation3], %s137_s9, %s137_s9, %s138_s10  }
   0xd   :  { %132 = dma.done.wait [#allocation3], 256  }
   0xe   :  { %133 = vsyncadd [#allocation3], 4294967040  ;;  %v139_v0 = vmov 1.0   ;;  %v24_v1 = vld [vmem:[#allocation2 + $0x8] sm:$0xff]  ;;  %v27_v2 = vld [vmem:[#allocation2] sm:$0xff]  ;;  %s140_s13 = smov [#allocation5]  }
   0xf   :  { %28 = vst [vmem:[#allocation5] sm:$0xff] %v139_v0  ;;  %30 = vst [vmem:[#allocation5 + $0x8] sm:$0xff] %v24_v1  ;;  %v25_v3 = vmul.f32 %v24_v1, %v24_v1  ;;  %v37_v4 = vmul.f32 %v27_v2, %v24_v1  ;;  %v46_v5 = vmul.f32 %v27_v2, %v27_v2  ;;  %s75_s0 = sshll.u32 %s140_s13, 4  ;;  %s76_s0 = int_to_ptr.vmem [resolvable:$true] %s75_s0 }
  0x10   :  { %36 = vst [vmem:[#allocation5 + $0x20] sm:$0xff] %v27_v2  ;;  %s112_s14 = scalar_lea.vmem %s76_s0, 2048  ;;  %p117_p6 = scmp.lt.s32.totalorder %s76_s0, %s76_s0 }
  0x11   :  { %32 = vst [vmem:[#allocation5 + $0x10] sm:$0xff] %v25_v3  ;;  %v26_v6 = vmul.f32 %v25_v3, %v24_v1  ;;  %39 = vst [vmem:[#allocation5 + $0x28] sm:$0xff] %v37_v4  ;;  %v40_v7 = vmul.f32 %v27_v2, %v25_v3  ;;  %v49_v8 = vmul.f32 %v46_v5, %v24_v1  ;;  %p113_p5 = scmp.ne.s32.totalorder %s76_s0, %s112_s14  ;;  %p118_p7 = scmp.lt.s32.totalorder %s112_s14, %s112_s14 }
  0x12   :  { %48 = vst [vmem:[#allocation5 + $0x40] sm:$0xff] %v46_v5  ;;  %v52_v9 = vmul.f32 %v46_v5, %v25_v3  ;;  %v58_v10 = vmul.f32 %v46_v5, %v27_v2 }
  0x13   :  { %34 = vst [vmem:[#allocation5 + $0x18] sm:$0xff] %v26_v6  ;;  %42 = vst [vmem:[#allocation5 + $0x30] sm:$0xff] %v40_v7  ;;  %v43_v11 = vmul.f32 %v27_v2, %v26_v6  ;;  %v55_v12 = vmul.f32 %v46_v5, %v26_v6  ;;  %p119_p8 = por %p118_p7, %p117_p6 }
  0x14   :  { %51 = vst [vmem:[#allocation5 + $0x48] sm:$0xff] %v49_v8  ;;  %54 = vst [vmem:[#allocation5 + $0x50] sm:$0xff] %v52_v9  ;;  %v61_v13 = vmul.f32 %v58_v10, %v24_v1  ;;  %v64_v14 = vmul.f32 %v58_v10, %v25_v3  ;;  %v67_v15 = vmul.f32 %v58_v10, %v26_v6 }
  0x15   :  { %60 = vst [vmem:[#allocation5 + $0x60] sm:$0xff] %v58_v10  ;;  %45 = vst [vmem:[#allocation5 + $0x38] sm:$0xff] %v43_v11  ;;  %p120_p9 = pnand %p119_p8, %p113_p5 }
  0x16   :  { %57 = vst [vmem:[#allocation5 + $0x58] sm:$0xff] %v55_v12  ;;  %63 = vst [vmem:[#allocation5 + $0x68] sm:$0xff] %v61_v13 }
  0x17   :  { %66 = vst [vmem:[#allocation5 + $0x70] sm:$0xff] %v64_v14  ;;  %69 = vst [vmem:[#allocation5 + $0x78] sm:$0xff] %v67_v15 }
  0x18   :  { %123 = shalt.err (!%p120_p9)
}
  0x19   :  { %81 = dma.vmem_to_hbm [thread:$0]  %s76_s0, 2048, %s164_s1, [#allocation4], %s137_s9, %s137_s9, %s138_s10  }
  0x1a   :  { %134 = dma.done.wait [#allocation4], 2048  }
  0x1b   :  { %135 = vsyncadd [#allocation4], 4294965248 }
  0x1c   :  { %85 = vsyncpa [#allocation3], 1 }
  0x1d   :  { %86 = vsyncpa [#allocation4], 1 }

</bundles_post_ra>
